<compile_context>
chip_gen: v6e
topology: v6e:2x2x1
jax: 0.10.0
libtpu: 0.0.40
codegen_flags: <defaults>
</compile_context>

<pallas_src>
import functools
import math

import numpy as np
import jax
import jax.numpy as jnp
from jax.experimental import pallas as pl
from jax.experimental.pallas import tpu as pltpu


# ----------------------------------------------------------------------------- kernel bodies

def _kernel_body(x_ref, rh_ref, rwt_ref, inv_std_ref, mean_ref, out_ref, z_ref):
    """One grid step = one (channel, output-row-tile).

    x_ref   : (H_in, W_in)   VMEM f32   input channel (resident across the row-tile axis)
    rh_ref  : (TH, H_in)     VMEM bf16  row-resize tile (zero rows >= H_out)
    rwt_ref : (W_in, W_pad)  VMEM bf16  transposed col-resize matrix (zero cols >= W_out)
    inv_std : (C,)           SMEM f32   1 / std
    mean    : (C,)           SMEM f32   mean
    out_ref : (TH, W_pad)    VMEM       rows [t*TH, (t+1)*TH) of this image's batch slab
    z_ref   : (H_in, W_pad)  VMEM bf16  per-channel scratch: normalized + width-resized channel
    """
    c = pl.program_id(0)
    t = pl.program_id(1)

    @pl.when(t == 0)
    def _():
        # Normalize-before-resize, ONCE per channel, into a bf16 scratch that stays resident
        # across the (sequential) row-tile axis.  Zero columns of Rw^T implement the width
        # padding; zero rows of Rh (below) implement the height padding.
        xn = (x_ref[...] - mean_ref[c]) * inv_std_ref[c]
        z_ref[...] = jnp.dot(xn.astype(jnp.bfloat16), rwt_ref[...],
                             preferred_element_type=jnp.float32).astype(jnp.bfloat16)

    out = jnp.dot(rh_ref[...], z_ref[...], preferred_element_type=jnp.float32)
    out_ref[...] = out.astype(out_ref.dtype)


def _kernel_first(x_ref, rh_ref, rwt_ref, inv_std_ref, mean_ref, out_ref, z_ref):
    _kernel_body(x_ref, rh_ref, rwt_ref, inv_std_ref, mean_ref, out_ref, z_ref)


def _kernel_aliased(x_ref, rh_ref, rwt_ref, inv_std_ref, mean_ref, _batch_hbm_ref,
                    out_ref, z_ref):
    # _batch_hbm_ref is the aliased batch buffer (never read in-kernel).
    _kernel_body(x_ref, rh_ref, rwt_ref, inv_std_ref, mean_ref, out_ref, z_ref)


# ------------------------------------------------------------------------- resize matrices

def _bilinear_matrix(in_size, out_size, pad_size):
    """Resize matrix matching F.interpolate(mode='bilinear', align_corners=False,
    recompute_scale_factor=True): src = (dst + 0.5) * in/out - 0.5, clamped at 0.
    Rows >= out_size stay zero (this implements the batch_images zero padding)."""
    i = np.arange(out_size, dtype=np.float64)
    src = (i + 0.5) * (float(in_size) / float(out_size)) - 0.5
    src = np.maximum(src, 0.0)
    i0 = np.minimum(np.floor(src).astype(np.int64), in_size - 1)
    i1 = np.minimum(i0 + 1, in_size - 1)
    frac = (src - i0).astype(np.float32)
    m = np.zeros((pad_size, in_size), dtype=np.float32)
    rows = np.arange(out_size)
    np.add.at(m, (rows, i0), 1.0 - frac)
    np.add.at(m, (rows, i1), frac)
    return m


@functools.lru_cache(maxsize=32)   # bounded: don't retain device buffers forever
def _resize_matrix_bf16(in_size, out_size, pad_size, transpose):
    """Device-resident bf16 resize matrix, cached per shape (no per-call rebuild/upload)."""
    m = _bilinear_matrix(in_size, out_size, pad_size)
    if transpose:
        m = np.ascontiguousarray(m.T)
    return jnp.asarray(m, dtype=jnp.bfloat16)


# --------------------------------------------------------------------------- VMEM planning

def _vmem_budget_and_limit():
    """(tile-selection budget, vmem_limit_bytes) derived from the actual chip generation."""
    cap = 64 * 1024 * 1024               # conservative default (= v7x physical per-TC VMEM)
    try:
        info = pltpu.get_tpu_info()
        cap = int(getattr(info, "vmem_capacity_bytes", cap)) or cap
    except Exception:
        pass
    cap = max(32 * 1024 * 1024, min(cap, 128 * 1024 * 1024))
    limit = int(cap * 0.85)              # headroom for Mosaic internal scratch (esp. v7x)
    budget = int(cap * 0.70)             # working-set budget for tile selection, below limit
    return budget, limit


def _pick_tile_h(h_pad, h_in, w_in, w_pad, budget):
    """Largest multiple-of-8 divisor of H_pad whose working set fits the VMEM budget."""
    cands = [d for d in range(8, h_pad + 1, 8) if h_pad % d == 0]
    if not cands:
        cands = [h_pad]                  # full-extent block is always a legal tile
    cands = sorted(set(cands), reverse=True)

    def est(th):
        return (2 * h_in * w_in * 4      # input channel (double-buffered, f32)
                + 2 * th * h_in * 2      # Rh row tile (double-buffered, bf16)
                + 2 * w_in * w_pad * 2   # Rw^T constant block (double-buffered, bf16)
                + 2 * th * w_pad * 4     # output tile (double-buffered, f32)
                + h_in * w_pad * 2       # z scratch (bf16)
                + h_in * w_in * 6        # channel-init temps: normalized f32 + bf16 cast
                + h_in * w_pad * 4       # channel-init matmul f32 result temp
                + th * w_pad * 4)        # per-tile matmul result temp

    for th in cands:
        if est(th) <= budget:
            return th
    # TODO(synk): very large originals can exceed VMEM even at the smallest tile; a K-tiled
    # (over H_in) variant with an f32 accumulator scratch would be needed there.
    return cands[-1]


# ---------------------------------------------------------------------------- pallas_call

def _normalize_resize_into_batch(image, rh, rwt, inv_std, mean, n_idx, batch_shape,
                                 batched_prev, tile_h, vmem_limit):
    c, h_in, w_in = image.shape
    _, _, h_pad, w_pad = batch_shape

    in_specs = [
        # Input channel: block index constant along the row-tile axis -> stays resident
        # in VMEM (one DMA per channel).
        pl.BlockSpec((pl.Squeezed(), h_in, w_in), lambda ci, t: (ci, 0, 0)),
        pl.BlockSpec((tile_h, h_in), lambda ci, t: (t, 0)),
        pl.BlockSpec((w_in, w_pad), lambda ci, t: (0, 0)),
        pl.BlockSpec(memory_space=pltpu.MemorySpace.SMEM),
        pl.BlockSpec(memory_space=pltpu.MemorySpace.SMEM),
    ]
    operands = [image, rh, rwt, inv_std, mean]
    if batched_prev is None:
        kernel = _kernel_first
        io_alias = {}
    else:
        kernel = _kernel_aliased
        in_specs.append(pl.BlockSpec(memory_space=pl.ANY))   # aliased batch buffer (unread)
        operands.append(batched_prev)
        io_alias = {5: 0}                                    # write in place into the batch

    return pl.pallas_call(
        kernel,
        out_shape=jax.ShapeDtypeStruct(batch_shape, image.dtype),
        grid=(c, h_pad // tile_h),
        in_specs=in_specs,
        out_specs=pl.BlockSpec((pl.Squeezed(), pl.Squeezed(), tile_h, w_pad),
                               lambda ci, t: (n_idx, ci, t, 0)),
        scratch_shapes=[pltpu.VMEM((h_in, w_pad), jnp.bfloat16)],
        input_output_aliases=io_alias,
        compiler_params=pltpu.CompilerParams(
            # The row-tile axis must be "arbitrary" so the per-channel z scratch (written at
            # t == 0) stays valid across row tiles.  The channel axis stays "parallel"; on
            # v7x a 3-wide leading parallel axis is a 2:1 core split -- accepted trade-off
            # for channel residency.
            dimension_semantics=("parallel", "arbitrary"),
            vmem_limit_bytes=vmem_limit),
    )(*operands)


# ------------------------------------------------------------------------------- wrapper

def generalized_rcnn_transform_vrb(images, min_size, max_size, image_mean, image_std,
                                   size_divisible=32):
    """Forward pass of GeneralizedRCNNTransformVRB (eval mode, targets=None).

    Returns (batched_images, image_sizes) -- the contents of the ImageList.
    Note: size_divisible=128 would make every output row lane-dense (unmasked vector stores)
    at the cost of extra zero columns; the default 32 matches torchvision's batch_images().
    """
    if not isinstance(min_size, (list, tuple)):
        min_size = (min_size,)
    # Eval mode: size = min_size[-1].
    # TODO(synk): training-mode torch_choice (random min_size pick) is not implemented.
    size = float(min_size[-1])
    max_size_f = float(max_size)

    # _resize_image_and_masks scale-factor logic (pure Python glue, matches torch doubles).
    resized_sizes = []
    for img in images:
        if img.ndim != 3:
            raise ValueError("images is expected to be a list of 3d tensors [C, H, W]")
        _, h, w = img.shape
        mn, mx = float(min(h, w)), float(max(h, w))
        scale = size / mn
        if mx * scale > max_size_f:
            scale = max_size_f / mx
        resized_sizes.append((int(math.floor(h * scale)), int(math.floor(w * scale))))

    # batch_images(): pad per-axis maxima up to multiples of size_divisible.
    stride = float(size_divisible)
    h_pad = int(math.ceil(max(s[0] for s in resized_sizes) / stride) * stride)
    w_pad = int(math.ceil(max(s[1] for s in resized_sizes) / stride) * stride)

    n = len(images)
    c = images[0].shape[0]
    mean = jnp.asarray(np.asarray(image_mean, dtype=np.float32))
    inv_std = jnp.asarray(1.0 / np.asarray(image_std, dtype=np.float32))

    budget, vmem_limit = _vmem_budget_and_limit()
    batch_shape = (n, c, h_pad, w_pad)

    # No jnp.zeros prepass: every element of the batch is written by exactly one per-image
    # call (padding comes from the zero rows/cols of Rh / Rw^T), so the first call allocates
    # the buffer and later calls alias into it -- saves a full HBM zero-fill pass.
    batched = None
    for idx, (img, (h_out, w_out)) in enumerate(zip(images, resized_sizes)):
        _, h_in, w_in = img.shape
        rh = _resize_matrix_bf16(h_in, h_out, h_pad, False)     # (H_pad, H_in)  bf16
        rwt = _resize_matrix_bf16(w_in, w_out, w_pad, True)     # (W_in, W_pad)  bf16
        tile_h = _pick_tile_h(h_pad, h_in, w_in, w_pad, budget)
        batched = _normalize_resize_into_batch(
            img, rh, rwt, inv_std, mean, idx, batch_shape, batched, tile_h, vmem_limit)

    # TODO(synk): target (boxes / keypoints / masks) resizing is skipped; this path matches
    # the default forward(images, targets=None).
    return batched, list(resized_sizes)


# -------------------------------------------------------------------------------- example

if __name__ == "__main__":
    key = jax.random.PRNGKey(0)
    k1, k2 = jax.random.split(key)

    # Two small CHW images of different sizes (list-of-3D-tensors input, like PyTorch).
    img0 = jax.random.uniform(k1, (3, 24, 32), dtype=jnp.float32)
    img1 = jax.random.uniform(k2, (3, 20, 30), dtype=jnp.float32)
    images = [img0, img1]

    image_mean = [0.485, 0.456, 0.406]
    image_std = [0.229, 0.224, 0.225]
    min_size, max_size = 16, 32

    batched, image_sizes = generalized_rcnn_transform_vrb(
        images, min_size, max_size, image_mean, image_std)
    batched = jax.block_until_ready(batched)

    # batch_images() semantics.
    assert batched.ndim == 4 and batched.shape[0] == 2 and batched.shape[1] == 3
    assert batched.shape[2] % 32 == 0 and batched.shape[3] % 32 == 0
    assert len(image_sizes) == 2 and all(len(s) == 2 for s in image_sizes)
    assert bool(jnp.all(jnp.isfinite(batched)))

    # Numerical check against an f32 normalize -> bilinear-resize -> zero-pad reference
    # (kernel uses bf16 MXU operands with f32 accumulation, so tolerance is relaxed).
    mean_np = np.asarray(image_mean, np.float32)
    std_np = np.asarray(image_std, np.float32)
    ref = np.zeros(batched.shape, np.float32)
    for i, (img, (h_out, w_out)) in enumerate(zip(images, image_sizes)):
        x = np.asarray(img, np.float32)
        _, h_in, w_in = x.shape
        rh_f32 = _bilinear_matrix(h_in, h_out, batched.shape[2])
        rw_f32 = _bilinear_matrix(w_in, w_out, batched.shape[3])
        xn = (x - mean_np[:, None, None]) / std_np[:, None, None]
        ref[i] = np.einsum("ph,chw,qw->cpq", rh_f32, xn, rw_f32)
    max_err = float(np.max(np.abs(np.asarray(batched, np.float32) - ref)))
    assert max_err < 0.1, f"max abs error vs f32 reference: {max_err}"

    print("KERNEL_OK")
</pallas_src>

<mosaic_0001>
module attributes {stable_mosaic.version = 11 : i64} {
  func.func @_kernel_first(%arg0: i32, %arg1: i32, %arg2: memref<1x24x32xf32, #tpu.memory_space<vmem>>, %arg3: memref<32x24xbf16, #tpu.memory_space<vmem>>, %arg4: memref<32x32xbf16, #tpu.memory_space<vmem>>, %arg5: memref<3xf32, #tpu.memory_space<smem>>, %arg6: memref<3xf32, #tpu.memory_space<smem>>, %arg7: memref<1x1x32x32xf32, #tpu.memory_space<vmem>>, %arg8: memref<24x32xbf16, #tpu.memory_space<vmem>>) attributes {dimension_semantics = [#tpu.dimension_semantics<parallel>, #tpu.dimension_semantics<arbitrary>], iteration_bounds = array<i64: 3, 1>, scalar_prefetch = 0 : i64, scratch_operands = 1 : i64, tpu.core_type = #tpu.core_type<tc>, window_params = [{transform_indices = @transform_0, window_bounds = array<i64: 1, 24, 32>}, {transform_indices = @transform_1, window_bounds = array<i64: 32, 24>}, {pipeline_mode = #tpu.pipeline_mode<synchronous>, transform_indices = @transform_2, window_bounds = array<i64: 32, 32>}, {transform_indices = @transform_3, window_bounds = array<i64: 3>}, {transform_indices = @transform_4, window_bounds = array<i64: 3>}, {transform_indices = @transform_5, window_bounds = array<i64: 1, 1, 32, 32>}]} {
    %c0_i32 = arith.constant 0 : i32
    %0 = arith.cmpi eq, %arg1, %c0_i32 : i32
    %1 = arith.extui %0 : i1 to i32
    %c0_i32_0 = arith.constant 0 : i32
    %2 = arith.cmpi ne, %1, %c0_i32_0 : i32
    scf.if %2 {
      %c0_8 = arith.constant 0 : index
      %c0_9 = arith.constant 0 : index
      %c0_10 = arith.constant 0 : index
      %9 = vector.load %arg2[%c0_8, %c0_9, %c0_10] : memref<1x24x32xf32, #tpu.memory_space<vmem>>, vector<1x24x32xf32>
      %10 = vector.shape_cast %9 : vector<1x24x32xf32> to vector<24x32xf32>
      %11 = arith.index_cast %arg0 : i32 to index
      %12 = memref.load %arg6[%11] : memref<3xf32, #tpu.memory_space<smem>>
      %13 = vector.broadcast %12 : f32 to vector<24x32xf32>
      %14 = arith.subf %10, %13 : vector<24x32xf32>
      %15 = arith.index_cast %arg0 : i32 to index
      %16 = memref.load %arg5[%15] : memref<3xf32, #tpu.memory_space<smem>>
      %17 = vector.broadcast %16 : f32 to vector<24x32xf32>
      %18 = arith.mulf %14, %17 : vector<24x32xf32>
      %19 = arith.truncf %18 : vector<24x32xf32> to vector<24x32xbf16>
      %c0_11 = arith.constant 0 : index
      %c0_12 = arith.constant 0 : index
      %20 = vector.load %arg4[%c0_11, %c0_12] : memref<32x32xbf16, #tpu.memory_space<vmem>>, vector<32x32xbf16>
      %cst_13 = arith.constant dense<0.000000e+00> : vector<24x32xf32>
      %21 = tpu.matmul %19, %20, %cst_13 {dimension_numbers = #tpu.dot_dimension_numbers<[1], [0], [0], [1], [0, 0, 1, 1], [], []>} : vector<24x32xbf16>, vector<32x32xbf16>, vector<24x32xf32> -> vector<24x32xf32>
      %22 = arith.truncf %21 : vector<24x32xf32> to vector<24x32xbf16>
      %c0_14 = arith.constant 0 : index
      %c0_15 = arith.constant 0 : index
      %23 = vector.load %arg8[%c0_14, %c0_15] : memref<24x32xbf16, #tpu.memory_space<vmem>>, vector<24x32xbf16>
      tpu.vector_store %arg8[%c0_14, %c0_15], %22 {strides = array<i32>} : memref<24x32xbf16, #tpu.memory_space<vmem>>, vector<24x32xbf16>,
    } else {
    }
    %c0 = arith.constant 0 : index
    %c0_1 = arith.constant 0 : index
    %3 = vector.load %arg3[%c0, %c0_1] : memref<32x24xbf16, #tpu.memory_space<vmem>>, vector<32x24xbf16>
    %c0_2 = arith.constant 0 : index
    %c0_3 = arith.constant 0 : index
    %4 = vector.load %arg8[%c0_2, %c0_3] : memref<24x32xbf16, #tpu.memory_space<vmem>>, vector<24x32xbf16>
    %cst = arith.constant dense<0.000000e+00> : vector<32x32xf32>
    %5 = tpu.matmul %3, %4, %cst {dimension_numbers = #tpu.dot_dimension_numbers<[1], [0], [0], [1], [0, 0, 1, 1], [], []>} : vector<32x24xbf16>, vector<24x32xbf16>, vector<32x32xf32> -> vector<32x32xf32>
    %c0_4 = arith.constant 0 : index
    %c0_5 = arith.constant 0 : index
    %c0_6 = arith.constant 0 : index
    %c0_7 = arith.constant 0 : index
    %6 = vector.load %arg7[%c0_4, %c0_5, %c0_6, %c0_7] : memref<1x1x32x32xf32, #tpu.memory_space<vmem>>, vector<1x1x32x32xf32>
    %7 = vector.shape_cast %6 : vector<1x1x32x32xf32> to vector<32x32xf32>
    %8 = vector.shape_cast %5 : vector<32x32xf32> to vector<1x1x32x32xf32>
    tpu.vector_store %arg7[%c0_4, %c0_5, %c0_6, %c0_7], %8 {strides = array<i32>} : memref<1x1x32x32xf32, #tpu.memory_space<vmem>>, vector<1x1x32x32xf32>,
    return
  }
  func.func @transform_0(%arg0: i32, %arg1: i32) -> (i32, i32, i32) {
    %c0_i32 = arith.constant 0 : i32
    %c0_i32_0 = arith.constant 0 : i32
    %c0_i32_1 = arith.constant 0 : i32
    return %arg0, %c0_i32, %c0_i32_0 : i32, i32, i32
  }
  func.func @transform_1(%arg0: i32, %arg1: i32) -> (i32, i32) {
    %c0_i32 = arith.constant 0 : i32
    %c0_i32_0 = arith.constant 0 : i32
    return %arg1, %c0_i32 : i32, i32
  }
  func.func @transform_2(%arg0: i32, %arg1: i32) -> (i32, i32) {
    %c0_i32 = arith.constant 0 : i32
    %c0_i32_0 = arith.constant 0 : i32
    %c0_i32_1 = arith.constant 0 : i32
    return %c0_i32, %c0_i32_0 : i32, i32
  }
  func.func @transform_3(%arg0: i32, %arg1: i32) -> i32 {
    %c0_i32 = arith.constant 0 : i32
    %c0_i32_0 = arith.constant 0 : i32
    return %c0_i32 : i32
  }
  func.func @transform_4(%arg0: i32, %arg1: i32) -> i32 {
    %c0_i32 = arith.constant 0 : i32
    %c0_i32_0 = arith.constant 0 : i32
    return %c0_i32 : i32
  }
  func.func @transform_5(%arg0: i32, %arg1: i32) -> (i32, i32, i32, i32) {
    %c0_i32 = arith.constant 0 : i32
    %c0_i32_0 = arith.constant 0 : i32
    %c0_i32_1 = arith.constant 0 : i32
    return %c0_i32, %arg0, %arg1, %c0_i32_0 : i32, i32, i32, i32
  }
}

</mosaic_0001>

<bundles_post_ra>
// kernel: tpu_custom_call.1
= control target key start
LH: loop header
LB: loop body
LE: loop exit
PB: predicated region body
PF: predicated region fallthrough
CT: control target
= control target key end

     0   :  { %s1191_s0 = inlined_call_operand.hbm [shape: f32[3,24,32], index: 0, kind: input, shape index: {}]   ;;  %s1192_s1 = inlined_call_operand.vmem [shape: bf16[32,24], index: 1, kind: input, shape index: {}]   ;;  %s1193_s2 = inlined_call_operand.vmem [shape: bf16[32,32], index: 2, kind: input, shape index: {}]   ;;  %s1194_s3 = inlined_call_operand.vmem [shape: f32[3], index: 3, kind: input, shape index: {}]   ;;  %s1195_s4 = inlined_call_operand.vmem [shape: f32[3], index: 4, kind: input, shape index: {}]   ;;  %s1196_s5 = inlined_call_operand.hbm [shape: f32[2,3,32,32], index: 5, kind: output, shape index: {}]  }
   0x1   :  { %1204 = sst [smem:[#allocation16_spill]] %s1194_s3 }
   0x2   :  { %1205 = sst [smem:[#allocation17_spill]] %s1195_s4 }
   0x3   :  { %10 = vsyncpa [#allocation4], 0 }
   0x4   :  { %12 = vsyncpa [#allocation4 + $0x1], 0 }
   0x5   :  { %13 = vsyncpa [#allocation6], 0 }
   0x6   :  { %14 = vsyncpa [#allocation9], 0 }
   0x7   :  { %15 = vsyncpa [#allocation5], 0 }
   0x8   :  { %17 = vsyncpa [#allocation5 + $0x1], 0  ;;  %s984_s18 = smov 0   ;;  %s986_s19 = smov 0  }
   0x9   :  { %s988_s20 = smov 0   ;;  %s990_s21 = smov 0  }
   0xa   :  { %s992_s22 = smov 0   ;;  %s994_s23 = smov 0  }
   0xb LB: > { %s643_s24 = sadd.s32 4294967295, %s944_s23   ;;  %s644_s25 = sadd.s32 4294967294, %s944_s23   ;;  %s944_s23 = sphi %s994_s23, %s23_s23   ;;  %s940_s22 = sphi %s992_s22, %s1228_s22   ;;  %s936_s21 = sphi %s990_s21, %s1227_s21   ;;  %s932_s20 = sphi %s988_s20, %s1226_s20   ;;  %s928_s19 = sphi %s986_s19, %s1225_s19   ;;  %s924_s18 = sphi %s984_s18, %s1224_s18  }
   0xc   : > { %s42_s26 = sadd.s32 1, %s932_s20  ;;  %p49_p0 = scmp.ne.s32.totalorder %s932_s20, %s928_s19 }
   0xd   : > { %p50_p1 = scmp.eq.s32.totalorder %s944_s23, 0  ;;  %p55_p2 = scmp.ne.s32.totalorder %s928_s19, %s924_s18 }
   0xe   : > { %p1022_p3 = scmp.eq.s32.totalorder %s643_s24, 0  ;;  %p170_p4 = scmp.eq.s32.totalorder %s643_s24, 2 }
   0xf   : > { %p1026_p5 = por %p50_p1, %p49_p0  ;;  %p176_p6 = scmp.eq.s32.totalorder %s644_s25, 2 }
  0x10   : > { %s1206_s27 = scalar_select %p1022_p3, 1, 0 }
  0x11   : > { %p1032_p7 = por %p1022_p3, %p55_p2  ;;  %p1036_p8 = por %p170_p4, %p49_p0 }
  0x12   : > { %p1040_p9 = por %p176_p6, %p55_p2  ;;  %p645_p10 = scmp.ge.s32.totalorder %s944_s23, 1 }
  0x13   : > { %s1208_s29 = scalar_select %p1032_p7, 1, 0 }
  0x14   : > { %s1209_s30 = scalar_select %p1036_p8, 1, 0 }
  0x15   : > { %s1210_s6 = scalar_select %p1040_p9, 1, 0 }
  0x16   : > { %p183_p11 = scmp.lt.s32.totalorder %s944_s23, 4  ;;  %s1211_s3 = sld [smem:[#allocation16_spill]] }
  0x17   : > { %p734_p13 = scmp.lt.s32.totalorder %s944_s23, 3  ;;  %s1213_s4 = sld [smem:[#allocation17_spill]] }
  0x18   : > { %p1049_p12 = pnand %p645_p10, %p183_p11 }
  0x19   : > { %p1061_p1 = pnand %p734_p13, %p1026_p5 }
  0x1a   : > { %s1212_s10 = scalar_select %p1049_p12, 1, 0 }
  0x1b   : > { %p717_p0 = pneg %p1049_p12 }
  0x1c   : > { %s208_s9 = sshll.u32 %s1211_s3, 4  ;;  %s209_s9 = int_to_ptr.vmem [resolvable:$true] %s208_s9 }
  0x1d   : > { %s219_s13 = sshll.u32 %s1213_s4, 4  ;;  %p1067_p2 = pnand %p717_p0, %p1022_p3  ;;  %s220_s13 = int_to_ptr.vmem [resolvable:$true] %s219_s13 }
  0x1e   : > { %s1214_s14 = scalar_select %p1061_p1, 1, 0 }
  0x1f   : > { %s798_s16 = scalar_lea.vmem %s209_s9, 16  ;;  %p800_p6 = pneg %p1067_p2 }
  0x20   : > { %p799_p4 = scmp.ne.s32.totalorder %s209_s9, %s798_s16  ;;  %p806_p9 = scmp.lt.s32.totalorder %s209_s9, %s209_s9 }
  0x21   : > { %p807_p8 = scmp.lt.s32.totalorder %s798_s16, %s798_s16 }
  0x22   : > { %p801_p10 = pnand %p800_p6, %p799_p4 }
  0x23   : > { %p808_p7 = por %p807_p8, %p806_p9 }
  0x24   : > { %p802_p11 = pneg %p801_p10 }
  0x26   : > { %p809_p5 = pnand %p808_p7, %p802_p11 }
  0x28   : > { %812 = shalt.err (!%p809_p5)
}
  0x29   : > { %s946_s17 = smov [#allocation7]   ;;  %s813_s24 = scalar_lea.vmem %s220_s13, 16 }
  0x2a   : > { %720 = dma.vmem_to_smem (!%p1067_p2), %s209_s9, 16, %s946_s17, [#allocation6]  }
  0x2b   : > { %p814_p13 = scmp.ne.s32.totalorder %s220_s13, %s813_s24  ;;  %p821_p12 = scmp.lt.s32.totalorder %s220_s13, %s220_s13 }
  0x2c   : > { %p822_p1 = scmp.lt.s32.totalorder %s813_s24, %s813_s24 }
  0x2d   : > { %p816_p0 = pnand %p814_p13, %p800_p6 }
  0x2e   : > { %p823_p4 = por %p822_p1, %p821_p12 }
  0x2f   : > { %p817_p3 = pneg %p816_p0 }
  0x31   : > { %p824_p10 = pnand %p823_p4, %p817_p3 }
  0x33   : > { %827 = shalt.err (!%p824_p10)
}
  0x34   : > { %s947_s25 = smov [#allocation8]   ;;  %s35_s28 = sadd.s32 1, %s940_s22 }
  0x35   : > { %723 = dma.vmem_to_smem (!%p1067_p2), %s220_s13, 16, %s947_s25, [#allocation9]  }
  0x36   : > { %s230_s7 = sand.u32 1, %s932_s20   ;;  %p37_p7 = scmp.ge.s32.totalorder %s35_s28, 3 }
  0x37   : > { %s702_s8 = smul.u32 24, %s230_s7  ;;  %s231_s13 = scalar_lea.sflag [#allocation4], %s230_s7 }
  0x38   : > { %s1230_s28 = smov (%p37_p7, %s35_s28), 0  ;;  %s703_s9 = smul.u32 384, %s940_s22 }
  0x39   : > { %1216 = sst [smem:[#allocation15_spill]] %s1230_s28  ;;  %s39_s11 = ssub.s32 %s940_s22, %s1230_s28 }
  0x3a   : > { %s234_s12 = scalar_lea.vmem [#allocation3], %s702_s8  ;;  %p40_p3 = scmp.eq.s32.totalorder %s39_s11, 0 }
  0x3b   : > { %s241_s16 = sshll.u32 %s234_s12, 4  ;;  %s240_s24 = scalar_lea.hbm %s1191_s0, %s703_s9  ;;  %s242_s16 = int_to_ptr.vmem [resolvable:$true] %s241_s16 }
  0x3c   : > { %s1090_s3 = scalar_select %p40_p3, %s932_s20, %s42_s26  }
  0x3d   : > { %p1217_p8 = scmp.ne.s32.totalorder %s1214_s14, 0  ;;  %s841_s25 = scalar_lea.vmem %s242_s16, 384 }
  0x3e   : > { %p842_p12 = scmp.ne.s32.totalorder %s242_s16, %s841_s25  ;;  %s948_s4 = smov [#allocation3]  }
  0x3f   : > { %p830_p9 = pneg %p1217_p8  ;;  %s846_s28 = sshll.u32 %s948_s4, 4  ;;  %s847_s28 = int_to_ptr.vmem [resolvable:$false] %s846_s28 }
  0x40   : > { %s848_s8 = scalar_lea.vmem %s847_s28, 768  ;;  %p849_p6 = scmp.lt.s32.totalorder %s242_s16, %s847_s28 }
  0x41   : > { %p844_p1 = pnand %p842_p12, %p830_p9  ;;  %p850_p11 = scmp.lt.s32.totalorder %s848_s8, %s841_s25 }
  0x43   : > { %p845_p2 = pneg %p844_p1  ;;  %p851_p5 = por %p850_p11, %p849_p6 }
  0x45   : > { %p852_p13 = pnand %p851_p5, %p845_p2 }
  0x47   : > { %855 = shalt.err (!%p852_p13)
}
  0x48   : > { %s949_s9 = smov 128   ;;  %s950_s26 = smov 8  }
  0x49   : > { %727 = dma.hbm_to_vmem [thread:$0]  (!%p1217_p8), %s240_s24, 384, %s242_s16, %s231_s13, %s949_s9, %s949_s9, %s950_s26  }
  0x4a   : > { %p1218_p0 = scmp.ne.s32.totalorder %s1212_s10, 0 }
  0x4b   : > { %s1099_s7 = sand.u32 (!%p1218_p0), 1, %s928_s19   ;;  %p1219_p4 = scmp.ne.s32.totalorder (!%p1218_p0), %s1208_s29, 0 }
  0x4c   : > { %253 = sbr.rel (%p1218_p0) target bundleno = 529 (0x211), region = 40  ;;  %s256_s28 = scalar_lea.sflag (!%p1218_p0), [#allocation4], %s1099_s7 }
  0x4d   : > { %s704_s4 = smul.u32 (!%p1218_p0), 24, %s1099_s7 }
  0x4f   : > { %s259_s11 = scalar_lea.vmem (!%p1218_p0), [#allocation3], %s704_s4 }
  0x51   : > { %907 = dma.done.wait (%p1219_p4), %s256_s28, 384  }
  0x52   : > { %909 = vsyncadd (%p1219_p4), %s256_s28, 4294966912  ;;  %p1220_p10 = scmp.ne.s32.totalorder %s1206_s27, 0 }
  0x54   : > { %911 = dma.done.wait (%p1220_p10), [#allocation6], 16  }
  0x55   : > { %913 = vsyncadd (%p1220_p10), [#allocation6], 4294967280 }
  0x56   : > { %915 = dma.done.wait (%p1220_p10), [#allocation9], 16  }
  0x57   : > { %917 = vsyncadd (%p1220_p10), [#allocation9], 4294967280 }
  0x58   : > { %272 = sfence }
  0x59   : > { %v792_v0 = vld [vmem:[%s1193_s2 + $0x8] sm:$0xff]   ;;  %s315_s29 = sld [smem:[#allocation8 + %s936_s21]]  ;;  %v793_v1 = vld [vmem:[%s1193_s2] sm:$0xff]   ;;  %vm343_vm0 = vcmask 261120   ;;  %vm441_vm1 = vcmask 195584   ;;  %vm411_vm2 = vcmask 257024  }
  0x5a   : > { %s320_s15 = sld [smem:[#allocation7 + %s936_s21]]  ;;  %685 = vmatprep.subr.bf16.mxu0 %v792_v0  ;;  %v312_v2 = vld [vmem:[%s259_s11] sm:$0xff]  ;;  %v313_v3 = vld [vmem:[%s259_s11 + $0x8] sm:$0xff]  ;;  %v314_v4 = vld [vmem:[%s259_s11 + $0x10] sm:$0xff]  ;;  %vm448_vm3 = vcmask 1043456   ;;  %s654_s25 = sshll.u32 %s1099_s7, 5 }
  0x5b   : > { %686 = vmatpush3.bf16.msra.mxu0 %v792_v0  ;;  %v796_v15 = vld [vmem:[%s1192_s1] sm:$0xff]   ;;  %v797_v26 = vld [vmem:[%s1192_s1 + $0x8] sm:$0xff]   ;;  %s299_s8 = scalar_lea.vmem [#allocation10], %s654_s25  ;;  %s676_s26 = sshll.u32 %s936_s21, 9 }
  0x5c   : > { %687 = vmatprep.subr.bf16.mxu0 %v793_v1  ;;  %697 = vmatprep.mubr.msk.bf16.mxu1 %vm441_vm1, %v796_v15  ;;  %s522_s9 = sshll.u32 %s299_s8, 4  ;;  %s1142_s11 = scalar_lea.hbm %s1196_s5, %s676_s26  ;;  %s1136_s9 = int_to_ptr.vmem [resolvable:$true] %s522_s9 }
  0x5d   : > { %s507_s21 = scalar_lea.sflag [#allocation5], %s1099_s7  ;;  %s856_s10 = scalar_lea.vmem %s1136_s9, 512 }
  0x5e   : > { %p857_p7 = scmp.ne.s32.totalorder %s1136_s9, %s856_s10  ;;  %p1221_p3 = scmp.ne.s32.totalorder %s1209_s30, 0 }
  0x5f   : > { %v316_v5 = vstv %s315_s29  ;;  %688 = vmatpush3.bf16.msra.mxu0 %v793_v1  ;;  %s951_s14 = smov [#allocation10]  }
  0x60   : > { %v317_v6 = vsub.f32 %v312_v2, %v316_v5  ;;  %v318_v7 = vsub.f32 %v313_v3, %v316_v5  ;;  %v321_v8 = vstv %s320_s15  ;;  %v319_v9 = vsub.f32 %v314_v4, %v316_v5  ;;  %p858_p8 = pnand %p857_p7, %p1221_p3  ;;  %s860_s29 = sshll.u32 %s951_s14, 4  ;;  %s861_s29 = int_to_ptr.vmem [resolvable:$false] %s860_s29 }
  0x61   : > { %s862_s12 = scalar_lea.vmem %s861_s29, 1024  ;;  %p863_p12 = scmp.lt.s32.totalorder %s1136_s9, %s861_s29 }
  0x62   : > { %v322_v10 = vmul.f32 %v321_v8, %v317_v6  ;;  %v323_v11 = vmul.f32 %v321_v8, %v318_v7  ;;  %v324_v12 = vmul.f32 %v321_v8, %v319_v9  ;;  %p859_p9 = pneg %p858_p8  ;;  %p864_p1 = scmp.lt.s32.totalorder %s862_s12, %s856_s10 }
  0x64   : > { %v325_v13 = vpack.c.bf16 %v323_v11, %v322_v10  ;;  %v326_v14 = vpack.c.bf16 %v324_v12, %v324_v12  ;;  %p865_p2 = por %p864_p1, %p863_p12 }
  0x66   : > { %689 = vmatprep.mubr.msk.bf16.mxu0 %vm343_vm0, %v325_v13  ;;  %p866_p6 = pnand %p865_p2, %p859_p9 }
  0x67   : > { %690 = vmatmul.mubr.msk.bf16.vlgmr.msra.gmra.mxu0 %vm343_vm0, %v326_v14 }
 0x127   : > { %v691_v16 = vpop.f32.mrf.mxu0 }
 0x128   : > { %v675_v17 = vpack.c.bf16 %v691_v16, %v691_v16 }
 0x129   : > { %v384_v18 = vpop.f32.mrf.mxu0 }
 0x12a   : > { %414 = vst.msk [vmem:[#allocation2 + $0x8] sm:$0xf] %vm411_vm2, %v675_v17  ;;  %v673_v19 = vpack.c.bf16 %v384_v18, %v384_v18 }
 0x12b   : > { %v692_v20 = vpop.f32.mrf.mxu0 }
 0x12c   : > { %412 = vst.msk [vmem:[#allocation2] sm:$0xf] %vm411_vm2, %v673_v19 }
 0x12d   : > { %v387_v21 = vpop.f32.mrf.mxu0 }
 0x12e   : > { %v674_v22 = vpack.c.bf16 %v387_v21, %v387_v21 }
 0x130   : > { %413 = vst.msk [vmem:[#allocation2 + $0x4] sm:$0xf] %vm411_vm2, %v674_v22 }
 0x131   : > { %v794_v23 = vld [vmem:[#allocation2 + $0x8] ss:$0 sps:$4 sm:$0xff]  }
 0x132   : > { %701 = vmatprep.subr.msk.bf16.mxu1 %vm448_vm3, %v794_v23  ;;  %v450_v24 = vsel %vm448_vm3, %v794_v23, 0 }
 0x133   : > { %694 = vmatpush3.bf16.msra.mxu1 %v450_v24 }
 0x137   : > { %v795_v25 = vld [vmem:[#allocation2] sm:$0xff]  }
 0x138   : > { %695 = vmatprep.subr.bf16.mxu1 %v795_v25 }
 0x139   : > { %696 = vmatpush3.bf16.msra.mxu1 %v795_v25 }
 0x13c   : > { %698 = vmatmul.mubr.msk.bf16.vlgmr.msra.gmra.mxu1 %vm441_vm1, %v797_v26 }
 0x1fc   : > { %v699_v27 = vpop.f32.mrf.mxu1 }
 0x1fd   : > { %504 = vst.msk [vmem:[%s299_s8 + $0x10] sm:$0xff] %vm343_vm0, %v699_v27 }
 0x1fe   : > { %v486_v28 = vpop.f32.mrf.mxu1 }
 0x1ff   : > { %502 = vst.msk [vmem:[%s299_s8] sm:$0xff] %vm343_vm0, %v486_v28 }
 0x200   : > { %v700_v29 = vpop.f32.mrf.mxu1 }
 0x201   : > { %505 = vst.msk [vmem:[%s299_s8 + $0x18] sm:$0xff] %vm343_vm0, %v700_v29 }
 0x202   : > { %v489_v30 = vpop.f32.mrf.mxu1 }
 0x203   : > { %503 = vst.msk [vmem:[%s299_s8 + $0x8] sm:$0xff] %vm343_vm0, %v489_v30 }
 0x204   : > { %869 = shalt.err (!%p866_p6)
}
 0x205   : > { %s870_s16 = scalar_lea.hbm %s1142_s11, 512  ;;  %s874_s17 = scalar_lea.hbm %s1196_s5, 3072 }
 0x206   : > { %p871_p11 = scmp.ne.s32.totalorder %s1142_s11, %s870_s16  ;;  %p875_p0 = scmp.lt.s32.totalorder %s1142_s11, %s1196_s5 }
 0x207   : > { %p876_p4 = scmp.lt.s32.totalorder %s874_s17, %s870_s16 }
 0x208   : > { %p872_p5 = pnand %p871_p11, %p1221_p3 }
 0x209   : > { %p877_p10 = por %p876_p4, %p875_p0 }
 0x20a   : > { %p873_p13 = pneg %p872_p5 }
 0x20c   : > { %p878_p7 = pnand %p877_p10, %p873_p13 }
 0x20e   : > { %881 = shalt.err (!%p878_p7)
}
 0x20f   : > { %s952_s25 = smov 128   ;;  %s953_s8 = smov 8  }
 0x210   : > { %715 = dma.vmem_to_hbm [thread:$0]  (%p1221_p3), %s1136_s9, 512, %s1142_s11, %s507_s21, %s952_s25, %s952_s25, %s953_s8  }
 0x211 PF: > { %p737_p8 = scmp.ge.s32.totalorder %s944_s23, 2  ;;  %s537_s26 = sand.u32 1, %s924_s18  }
 0x212   : > { %p1222_p9 = scmp.ne.s32.totalorder %s1210_s6, 0  ;;  %s538_s4 = scalar_lea.sflag [#allocation5], %s537_s26 }
 0x214   : > { %p729_p12 = pnand %p737_p8, %p1222_p9 }
 0x216   : > { %p730_p1 = pneg %p729_p12 }
 0x218   : > { %919 = dma.done.wait (%p730_p1), %s538_s4, 512  }
 0x219   : > { %921 = vsyncadd (%p730_p1), %s538_s4, 4294966784  ;;  %s23_s23 = sadd.s32 1, %s944_s23   ;;  %s1223_s30 = sld [smem:[#allocation15_spill]] }
 0x21a   : > { %p20_p2 = scmp.ge.s32.totalorder %s23_s23, 5   ;;  %s1224_s18 = smov %s928_s19 }
 0x21b   : > { %s1225_s19 = smov %s932_s20  ;;  %s1226_s20 = smov %s1090_s3 }
 0x21c   : > { %s1227_s21 = smov %s940_s22  ;;  %22 = sbr.rel (!%p20_p2) target bundleno = 11 (0xb), region = 101 }
 0x21f   : > { %s1228_s22 = smov %s1223_s30 }
 0x221   :  { %543 = vsyncpa [#allocation4], 1 }
 0x222   :  { %545 = vsyncpa [#allocation4 + $0x1], 1 }
 0x223   :  { %546 = vsyncpa [#allocation5], 1 }
 0x224   :  { %548 = vsyncpa [#allocation5 + $0x1], 1 }
 0x225   :  { %549 = vsyncpa [#allocation6], 1 }
 0x226   :  { %551 = vsyncpa [#allocation6 + $0x1], 1 }
 0x227   :  { %552 = vsyncpa [#allocation9], 1 }

</bundles_post_ra>
